<compile_context>
chip_gen: v5e
topology: v5e:2x2
jax: 0.10.0
libtpu: 0.0.40
codegen_flags: <defaults>
</compile_context>

<pallas_src>
import numpy as np

import jax
import jax.numpy as jnp
from jax.experimental import pallas as pl
from jax.experimental.pallas import tpu as pltpu


# ----------------------------------------------------------------------------
# Fused Pallas kernel: 3x (conv3x3 s2 p1 + ReLU) for the full (small) batch.
# ----------------------------------------------------------------------------
def _encoder_fused_kernel(x_ref,
                          st1_ref, lt1_ref, b1_ref,
                          st2_ref, lt2_ref, b2_ref,
                          st3_ref, lt3_ref, b3_ref,
                          o_ref):
    def conv_relu(xT, st_ref, lt_ref, b_ref):
        # xT     : (N*W,  Cin*H)       bf16  activations (width-major rows)
        # st_ref : (3, N*Wo, N*W)      bf16  0/1 width-tap selection (block-diag over batch)
        # lt_ref : (3, Cin*H, Cout*Ho) bf16  kh taps + stride-2 row selection + weights
        # b_ref  : (1, Cout*Ho)        f32   bias broadcast over rows
        acc = None
        for kw in range(3):  # static unroll: 3 pairs of plain 2-D MXU matmuls
            # select width taps first (Wo < W => cheaper second matmul)
            t = jnp.dot(st_ref[kw], xT, preferred_element_type=jnp.float32)
            y = jnp.dot(t.astype(jnp.bfloat16), lt_ref[kw],
                        preferred_element_type=jnp.float32)
            acc = y if acc is None else acc + y
        return jnp.maximum(acc + b_ref[...], 0.0)   # f32 bias + ReLU

    x = x_ref[...]                                          # (N*W, Cin*H) bf16
    h1 = conv_relu(x,  st1_ref, lt1_ref, b1_ref).astype(jnp.bfloat16)
    h2 = conv_relu(h1, st2_ref, lt2_ref, b2_ref).astype(jnp.bfloat16)
    h3 = conv_relu(h2, st3_ref, lt3_ref, b3_ref)            # f32 (N*Wo3, C3*H3)
    o_ref[...] = h3.astype(o_ref.dtype)


# ----------------------------------------------------------------------------
# Weight preprocessing: fold the stride-2/pad-1 3x3 taps into ST/LT matrices.
# (In a real deployment these would be precomputed once per weight set.)
# ----------------------------------------------------------------------------
def _conv_out_size(n):
    return (n + 2 - 3) // 2 + 1   # k=3, stride=2, pad=1


def _build_layer_mats(w, b, H, W, N, dtype=jnp.bfloat16):
    """w: (Cout, Cin, 3, 3) PyTorch layout, b: (Cout,).

    Returns:
      ST   : (3, N*Wo, N*W)       -- per-kw 0/1 width-tap (stride-2/pad-1)
                                     selection, block-diagonal over batch
      LT   : (3, Cin*H, Cout*Ho)  -- per-kw kh-taps + row selection + weights
      brow : (1, Cout*Ho) f32     -- bias broadcast over output rows
      Ho, Wo
    """
    Cout, Cin = int(w.shape[0]), int(w.shape[1])
    Ho, Wo = _conv_out_size(H), _conv_out_size(W)

    # P[o1, h, kh] = 1  iff  h == 2*o1 + kh - 1 and 0 <= h < H   (row taps)
    P = np.zeros((Ho, H, 3), np.float32)
    for kh in range(3):
        o1 = np.arange(Ho)
        h = 2 * o1 + kh - 1
        m = (h >= 0) & (h < H)
        P[o1[m], h[m], kh] = 1.0

    # ST_small[kw, o2, w_] = 1 iff w_ == 2*o2 + kw - 1 and 0 <= w_ < W
    ST_small = np.zeros((3, Wo, W), np.float32)
    for kw in range(3):
        o2 = np.arange(Wo)
        ww = 2 * o2 + kw - 1
        m = (ww >= 0) & (ww < W)
        ST_small[kw, o2[m], ww[m]] = 1.0
    # block-diagonal over the batch: ST[kw] = kron(I_N, ST_small[kw])
    eye = np.eye(N, dtype=np.float32)
    ST_np = np.stack([np.kron(eye, ST_small[kw]) for kw in range(3)], axis=0)

    # LT[kw, ci*H + h, co*Ho + o1] = sum_kh w[co, ci, kh, kw] * P[o1, h, kh]
    LT4 = jnp.einsum('ockw,phk->wchop', w.astype(jnp.float32),
                     jnp.asarray(P))                    # (3, Cin, H, Cout, Ho)
    LT = LT4.reshape(3, Cin * H, Cout * Ho).astype(dtype)
    ST = jnp.asarray(ST_np, dtype=dtype)
    brow = jnp.repeat(b.astype(jnp.float32), Ho).reshape(1, Cout * Ho)
    return ST, LT, brow, Ho, Wo


# ----------------------------------------------------------------------------
# Encoder parameters + forward
# ----------------------------------------------------------------------------
def init_encoder_params(key, input_channels, latent_channels):
    def conv_init(k, cout, cin):
        kw, kb = jax.random.split(k)
        fan_in = cin * 9
        bound = 1.0 / jnp.sqrt(fan_in)
        w = jax.random.uniform(kw, (cout, cin, 3, 3), jnp.float32, -bound, bound)
        b = jax.random.uniform(kb, (cout,), jnp.float32, -bound, bound)
        return w, b

    k1, k2, k3 = jax.random.split(key, 3)
    lc = latent_channels
    return {
        "conv1": conv_init(k1, lc, input_channels),
        "conv2": conv_init(k2, lc * 2, lc),
        "conv3": conv_init(k3, lc * 4, lc * 2),
    }


@jax.jit
def encoder_forward(params, x_nchw):
    N, Cin, H, W = x_nchw.shape
    w1, b1 = params["conv1"]
    w2, b2 = params["conv2"]
    w3, b3 = params["conv3"]

    ST1, LT1, b1r, H1, W1 = _build_layer_mats(w1, b1, H, W, N)
    ST2, LT2, b2r, H2, W2 = _build_layer_mats(w2, b2, H1, W1, N)
    ST3, LT3, b3r, H3, W3 = _build_layer_mats(w3, b3, H2, W2, N)
    C3 = int(w3.shape[0])

    # (N, C, H, W) -> (N*W, C*H): width-major rows, lane-dense (C*H) columns.
    xT = jnp.transpose(x_nchw, (0, 3, 1, 2)).reshape(N * W, Cin * H)
    xT = xT.astype(jnp.bfloat16)

    # Everything fits in a few KiB of VMEM -> single invocation, no grid:
    # whole arrays are resident, weights loaded once, no per-step overhead.
    # (For large batches one would tile the row dim over a "parallel" grid.)
    vmem = pl.BlockSpec(memory_space=pltpu.MemorySpace.VMEM)

    outT = pl.pallas_call(
        _encoder_fused_kernel,
        out_shape=jax.ShapeDtypeStruct((N * W3, C3 * H3), jnp.float32),
        in_specs=[vmem] * 10,
        out_specs=vmem,
    )(xT, ST1, LT1, b1r, ST2, LT2, b2r, ST3, LT3, b3r)

    # outT[n*W3 + o2, co*H3 + o1]  ->  NCHW
    return jnp.transpose(outT.reshape(N, W3, C3, H3), (0, 2, 3, 1))


# ----------------------------------------------------------------------------
# Pure-XLA f32 reference (for correctness check only)
# ----------------------------------------------------------------------------
def _reference_forward(params, x):
    def conv(x, w, b):
        y = jax.lax.conv_general_dilated(
            x, w, window_strides=(2, 2), padding=((1, 1), (1, 1)),
            dimension_numbers=('NCHW', 'OIHW', 'NCHW'),
            precision=jax.lax.Precision.HIGHEST)
        return jnp.maximum(y + b[None, :, None, None], 0.0)

    x = conv(x, *params["conv1"])
    x = conv(x, *params["conv2"])
    x = conv(x, *params["conv3"])
    return x


if __name__ == "__main__":
    key = jax.random.PRNGKey(0)
    k_params, k_x = jax.random.split(key)

    input_channels = 4
    latent_channels = 8
    params = init_encoder_params(k_params, input_channels, latent_channels)

    # x: (batch=2, channels=4, H=16, W=16), NCHW like the PyTorch module
    x = jax.random.normal(k_x, (2, input_channels, 16, 16), jnp.float32)

    out = jax.block_until_ready(encoder_forward(params, x))

    expected_shape = (2, latent_channels * 4, 2, 2)   # 16 -> 8 -> 4 -> 2 spatial
    assert out.shape == expected_shape, (out.shape, expected_shape)
    assert bool(jnp.all(out >= 0.0))                   # ReLU output is non-negative

    # Correctness vs f32 XLA conv reference (tolerance covers bf16 operands).
    ref = jax.block_until_ready(_reference_forward(params, x))
    max_err = float(jnp.max(jnp.abs(out - ref)))
    assert max_err < 0.2, f"max abs err vs reference too large: {max_err}"

    print("KERNEL_OK")
</pallas_src>

<mosaic_0001>
module attributes {stable_mosaic.version = 11 : i64} {
  func.func @_encoder_fused_kernel(%arg0: memref<32x64xbf16, #tpu.memory_space<vmem>>, %arg1: memref<3x16x32xbf16, #tpu.memory_space<vmem>>, %arg2: memref<3x64x64xbf16, #tpu.memory_space<vmem>>, %arg3: memref<1x64xf32, #tpu.memory_space<vmem>>, %arg4: memref<3x8x16xbf16, #tpu.memory_space<vmem>>, %arg5: memref<3x64x64xbf16, #tpu.memory_space<vmem>>, %arg6: memref<1x64xf32, #tpu.memory_space<vmem>>, %arg7: memref<3x4x8xbf16, #tpu.memory_space<vmem>>, %arg8: memref<3x64x64xbf16, #tpu.memory_space<vmem>>, %arg9: memref<1x64xf32, #tpu.memory_space<vmem>>, %arg10: memref<4x64xf32, #tpu.memory_space<vmem>>) attributes {dimension_semantics = [], scalar_prefetch = 0 : i64, scratch_operands = 0 : i64, tpu.core_type = #tpu.core_type<tc>} {
    %c0 = arith.constant 0 : index
    %c0_0 = arith.constant 0 : index
    %0 = vector.load %arg0[%c0, %c0_0] : memref<32x64xbf16, #tpu.memory_space<vmem>>, vector<32x64xbf16>
    %c0_1 = arith.constant 0 : index
    %c0_2 = arith.constant 0 : index
    %c0_3 = arith.constant 0 : index
    %1 = vector.load %arg1[%c0_1, %c0_2, %c0_3] : memref<3x16x32xbf16, #tpu.memory_space<vmem>>, vector<1x16x32xbf16>
    %2 = vector.shape_cast %1 : vector<1x16x32xbf16> to vector<16x32xbf16>
    %cst = arith.constant dense<0.000000e+00> : vector<16x64xf32>
    %3 = tpu.matmul %2, %0, %cst {dimension_numbers = #tpu.dot_dimension_numbers<[1], [0], [0], [1], [0, 0, 1, 1], [], []>} : vector<16x32xbf16>, vector<32x64xbf16>, vector<16x64xf32> -> vector<16x64xf32>
    %4 = arith.truncf %3 : vector<16x64xf32> to vector<16x64xbf16>
    %c0_4 = arith.constant 0 : index
    %c0_5 = arith.constant 0 : index
    %c0_6 = arith.constant 0 : index
    %5 = vector.load %arg2[%c0_4, %c0_5, %c0_6] : memref<3x64x64xbf16, #tpu.memory_space<vmem>>, vector<1x64x64xbf16>
    %6 = vector.shape_cast %5 : vector<1x64x64xbf16> to vector<64x64xbf16>
    %cst_7 = arith.constant dense<0.000000e+00> : vector<16x64xf32>
    %7 = tpu.matmul %4, %6, %cst_7 {dimension_numbers = #tpu.dot_dimension_numbers<[1], [0], [0], [1], [0, 0, 1, 1], [], []>} : vector<16x64xbf16>, vector<64x64xbf16>, vector<16x64xf32> -> vector<16x64xf32>
    %c1 = arith.constant 1 : index
    %c0_8 = arith.constant 0 : index
    %c0_9 = arith.constant 0 : index
    %8 = vector.load %arg1[%c1, %c0_8, %c0_9] : memref<3x16x32xbf16, #tpu.memory_space<vmem>>, vector<1x16x32xbf16>
    %9 = vector.shape_cast %8 : vector<1x16x32xbf16> to vector<16x32xbf16>
    %cst_10 = arith.constant dense<0.000000e+00> : vector<16x64xf32>
    %10 = tpu.matmul %9, %0, %cst_10 {dimension_numbers = #tpu.dot_dimension_numbers<[1], [0], [0], [1], [0, 0, 1, 1], [], []>} : vector<16x32xbf16>, vector<32x64xbf16>, vector<16x64xf32> -> vector<16x64xf32>
    %11 = arith.truncf %10 : vector<16x64xf32> to vector<16x64xbf16>
    %c1_11 = arith.constant 1 : index
    %c0_12 = arith.constant 0 : index
    %c0_13 = arith.constant 0 : index
    %12 = vector.load %arg2[%c1_11, %c0_12, %c0_13] : memref<3x64x64xbf16, #tpu.memory_space<vmem>>, vector<1x64x64xbf16>
    %13 = vector.shape_cast %12 : vector<1x64x64xbf16> to vector<64x64xbf16>
    %cst_14 = arith.constant dense<0.000000e+00> : vector<16x64xf32>
    %14 = tpu.matmul %11, %13, %cst_14 {dimension_numbers = #tpu.dot_dimension_numbers<[1], [0], [0], [1], [0, 0, 1, 1], [], []>} : vector<16x64xbf16>, vector<64x64xbf16>, vector<16x64xf32> -> vector<16x64xf32>
    %15 = arith.addf %7, %14 : vector<16x64xf32>
    %c2 = arith.constant 2 : index
    %c0_15 = arith.constant 0 : index
    %c0_16 = arith.constant 0 : index
    %16 = vector.load %arg1[%c2, %c0_15, %c0_16] : memref<3x16x32xbf16, #tpu.memory_space<vmem>>, vector<1x16x32xbf16>
    %17 = vector.shape_cast %16 : vector<1x16x32xbf16> to vector<16x32xbf16>
    %cst_17 = arith.constant dense<0.000000e+00> : vector<16x64xf32>
    %18 = tpu.matmul %17, %0, %cst_17 {dimension_numbers = #tpu.dot_dimension_numbers<[1], [0], [0], [1], [0, 0, 1, 1], [], []>} : vector<16x32xbf16>, vector<32x64xbf16>, vector<16x64xf32> -> vector<16x64xf32>
    %19 = arith.truncf %18 : vector<16x64xf32> to vector<16x64xbf16>
    %c2_18 = arith.constant 2 : index
    %c0_19 = arith.constant 0 : index
    %c0_20 = arith.constant 0 : index
    %20 = vector.load %arg2[%c2_18, %c0_19, %c0_20] : memref<3x64x64xbf16, #tpu.memory_space<vmem>>, vector<1x64x64xbf16>
    %21 = vector.shape_cast %20 : vector<1x64x64xbf16> to vector<64x64xbf16>
    %cst_21 = arith.constant dense<0.000000e+00> : vector<16x64xf32>
    %22 = tpu.matmul %19, %21, %cst_21 {dimension_numbers = #tpu.dot_dimension_numbers<[1], [0], [0], [1], [0, 0, 1, 1], [], []>} : vector<16x64xbf16>, vector<64x64xbf16>, vector<16x64xf32> -> vector<16x64xf32>
    %23 = arith.addf %15, %22 : vector<16x64xf32>
    %c0_22 = arith.constant 0 : index
    %c0_23 = arith.constant 0 : index
    %24 = vector.load %arg3[%c0_22, %c0_23] : memref<1x64xf32, #tpu.memory_space<vmem>>, vector<1x64xf32>
    %25 = vector.broadcast %24 : vector<1x64xf32> to vector<16x64xf32>
    %26 = arith.addf %23, %25 : vector<16x64xf32>
    %cst_24 = arith.constant 0.000000e+00 : f32
    %27 = vector.broadcast %cst_24 : f32 to vector<16x64xf32>
    %28 = arith.maximumf %26, %27 : vector<16x64xf32>
    %29 = arith.truncf %28 : vector<16x64xf32> to vector<16x64xbf16>
    %c0_25 = arith.constant 0 : index
    %c0_26 = arith.constant 0 : index
    %c0_27 = arith.constant 0 : index
    %30 = vector.load %arg4[%c0_25, %c0_26, %c0_27] : memref<3x8x16xbf16, #tpu.memory_space<vmem>>, vector<1x8x16xbf16>
    %31 = vector.shape_cast %30 : vector<1x8x16xbf16> to vector<8x16xbf16>
    %cst_28 = arith.constant dense<0.000000e+00> : vector<8x64xf32>
    %32 = tpu.matmul %31, %29, %cst_28 {dimension_numbers = #tpu.dot_dimension_numbers<[1], [0], [0], [1], [0, 0, 1, 1], [], []>} : vector<8x16xbf16>, vector<16x64xbf16>, vector<8x64xf32> -> vector<8x64xf32>
    %33 = arith.truncf %32 : vector<8x64xf32> to vector<8x64xbf16>
    %c0_29 = arith.constant 0 : index
    %c0_30 = arith.constant 0 : index
    %c0_31 = arith.constant 0 : index
    %34 = vector.load %arg5[%c0_29, %c0_30, %c0_31] : memref<3x64x64xbf16, #tpu.memory_space<vmem>>, vector<1x64x64xbf16>
    %35 = vector.shape_cast %34 : vector<1x64x64xbf16> to vector<64x64xbf16>
    %cst_32 = arith.constant dense<0.000000e+00> : vector<8x64xf32>
    %36 = tpu.matmul %33, %35, %cst_32 {dimension_numbers = #tpu.dot_dimension_numbers<[1], [0], [0], [1], [0, 0, 1, 1], [], []>} : vector<8x64xbf16>, vector<64x64xbf16>, vector<8x64xf32> -> vector<8x64xf32>
    %c1_33 = arith.constant 1 : index
    %c0_34 = arith.constant 0 : index
    %c0_35 = arith.constant 0 : index
    %37 = vector.load %arg4[%c1_33, %c0_34, %c0_35] : memref<3x8x16xbf16, #tpu.memory_space<vmem>>, vector<1x8x16xbf16>
    %38 = vector.shape_cast %37 : vector<1x8x16xbf16> to vector<8x16xbf16>
    %cst_36 = arith.constant dense<0.000000e+00> : vector<8x64xf32>
    %39 = tpu.matmul %38, %29, %cst_36 {dimension_numbers = #tpu.dot_dimension_numbers<[1], [0], [0], [1], [0, 0, 1, 1], [], []>} : vector<8x16xbf16>, vector<16x64xbf16>, vector<8x64xf32> -> vector<8x64xf32>
    %40 = arith.truncf %39 : vector<8x64xf32> to vector<8x64xbf16>
    %c1_37 = arith.constant 1 : index
    %c0_38 = arith.constant 0 : index
    %c0_39 = arith.constant 0 : index
    %41 = vector.load %arg5[%c1_37, %c0_38, %c0_39] : memref<3x64x64xbf16, #tpu.memory_space<vmem>>, vector<1x64x64xbf16>
    %42 = vector.shape_cast %41 : vector<1x64x64xbf16> to vector<64x64xbf16>
    %cst_40 = arith.constant dense<0.000000e+00> : vector<8x64xf32>
    %43 = tpu.matmul %40, %42, %cst_40 {dimension_numbers = #tpu.dot_dimension_numbers<[1], [0], [0], [1], [0, 0, 1, 1], [], []>} : vector<8x64xbf16>, vector<64x64xbf16>, vector<8x64xf32> -> vector<8x64xf32>
    %44 = arith.addf %36, %43 : vector<8x64xf32>
    %c2_41 = arith.constant 2 : index
    %c0_42 = arith.constant 0 : index
    %c0_43 = arith.constant 0 : index
    %45 = vector.load %arg4[%c2_41, %c0_42, %c0_43] : memref<3x8x16xbf16, #tpu.memory_space<vmem>>, vector<1x8x16xbf16>
    %46 = vector.shape_cast %45 : vector<1x8x16xbf16> to vector<8x16xbf16>
    %cst_44 = arith.constant dense<0.000000e+00> : vector<8x64xf32>
    %47 = tpu.matmul %46, %29, %cst_44 {dimension_numbers = #tpu.dot_dimension_numbers<[1], [0], [0], [1], [0, 0, 1, 1], [], []>} : vector<8x16xbf16>, vector<16x64xbf16>, vector<8x64xf32> -> vector<8x64xf32>
    %48 = arith.truncf %47 : vector<8x64xf32> to vector<8x64xbf16>
    %c2_45 = arith.constant 2 : index
    %c0_46 = arith.constant 0 : index
    %c0_47 = arith.constant 0 : index
    %49 = vector.load %arg5[%c2_45, %c0_46, %c0_47] : memref<3x64x64xbf16, #tpu.memory_space<vmem>>, vector<1x64x64xbf16>
    %50 = vector.shape_cast %49 : vector<1x64x64xbf16> to vector<64x64xbf16>
    %cst_48 = arith.constant dense<0.000000e+00> : vector<8x64xf32>
    %51 = tpu.matmul %48, %50, %cst_48 {dimension_numbers = #tpu.dot_dimension_numbers<[1], [0], [0], [1], [0, 0, 1, 1], [], []>} : vector<8x64xbf16>, vector<64x64xbf16>, vector<8x64xf32> -> vector<8x64xf32>
    %52 = arith.addf %44, %51 : vector<8x64xf32>
    %c0_49 = arith.constant 0 : index
    %c0_50 = arith.constant 0 : index
    %53 = vector.load %arg6[%c0_49, %c0_50] : memref<1x64xf32, #tpu.memory_space<vmem>>, vector<1x64xf32>
    %54 = vector.broadcast %53 : vector<1x64xf32> to vector<8x64xf32>
    %55 = arith.addf %52, %54 : vector<8x64xf32>
    %cst_51 = arith.constant 0.000000e+00 : f32
    %56 = vector.broadcast %cst_51 : f32 to vector<8x64xf32>
    %57 = arith.maximumf %55, %56 : vector<8x64xf32>
    %58 = arith.truncf %57 : vector<8x64xf32> to vector<8x64xbf16>
    %c0_52 = arith.constant 0 : index
    %c0_53 = arith.constant 0 : index
    %c0_54 = arith.constant 0 : index
    %59 = vector.load %arg7[%c0_52, %c0_53, %c0_54] : memref<3x4x8xbf16, #tpu.memory_space<vmem>>, vector<1x4x8xbf16>
    %60 = vector.shape_cast %59 : vector<1x4x8xbf16> to vector<4x8xbf16>
    %cst_55 = arith.constant dense<0.000000e+00> : vector<4x64xf32>
    %61 = tpu.matmul %60, %58, %cst_55 {dimension_numbers = #tpu.dot_dimension_numbers<[1], [0], [0], [1], [0, 0, 1, 1], [], []>} : vector<4x8xbf16>, vector<8x64xbf16>, vector<4x64xf32> -> vector<4x64xf32>
    %62 = arith.truncf %61 : vector<4x64xf32> to vector<4x64xbf16>
    %c0_56 = arith.constant 0 : index
    %c0_57 = arith.constant 0 : index
    %c0_58 = arith.constant 0 : index
    %63 = vector.load %arg8[%c0_56, %c0_57, %c0_58] : memref<3x64x64xbf16, #tpu.memory_space<vmem>>, vector<1x64x64xbf16>
    %64 = vector.shape_cast %63 : vector<1x64x64xbf16> to vector<64x64xbf16>
    %cst_59 = arith.constant dense<0.000000e+00> : vector<4x64xf32>
    %65 = tpu.matmul %62, %64, %cst_59 {dimension_numbers = #tpu.dot_dimension_numbers<[1], [0], [0], [1], [0, 0, 1, 1], [], []>} : vector<4x64xbf16>, vector<64x64xbf16>, vector<4x64xf32> -> vector<4x64xf32>
    %c1_60 = arith.constant 1 : index
    %c0_61 = arith.constant 0 : index
    %c0_62 = arith.constant 0 : index
    %66 = vector.load %arg7[%c1_60, %c0_61, %c0_62] : memref<3x4x8xbf16, #tpu.memory_space<vmem>>, vector<1x4x8xbf16>
    %67 = vector.shape_cast %66 : vector<1x4x8xbf16> to vector<4x8xbf16>
    %cst_63 = arith.constant dense<0.000000e+00> : vector<4x64xf32>
    %68 = tpu.matmul %67, %58, %cst_63 {dimension_numbers = #tpu.dot_dimension_numbers<[1], [0], [0], [1], [0, 0, 1, 1], [], []>} : vector<4x8xbf16>, vector<8x64xbf16>, vector<4x64xf32> -> vector<4x64xf32>
    %69 = arith.truncf %68 : vector<4x64xf32> to vector<4x64xbf16>
    %c1_64 = arith.constant 1 : index
    %c0_65 = arith.constant 0 : index
    %c0_66 = arith.constant 0 : index
    %70 = vector.load %arg8[%c1_64, %c0_65, %c0_66] : memref<3x64x64xbf16, #tpu.memory_space<vmem>>, vector<1x64x64xbf16>
    %71 = vector.shape_cast %70 : vector<1x64x64xbf16> to vector<64x64xbf16>
    %cst_67 = arith.constant dense<0.000000e+00> : vector<4x64xf32>
    %72 = tpu.matmul %69, %71, %cst_67 {dimension_numbers = #tpu.dot_dimension_numbers<[1], [0], [0], [1], [0, 0, 1, 1], [], []>} : vector<4x64xbf16>, vector<64x64xbf16>, vector<4x64xf32> -> vector<4x64xf32>
    %73 = arith.addf %65, %72 : vector<4x64xf32>
    %c2_68 = arith.constant 2 : index
    %c0_69 = arith.constant 0 : index
    %c0_70 = arith.constant 0 : index
    %74 = vector.load %arg7[%c2_68, %c0_69, %c0_70] : memref<3x4x8xbf16, #tpu.memory_space<vmem>>, vector<1x4x8xbf16>
    %75 = vector.shape_cast %74 : vector<1x4x8xbf16> to vector<4x8xbf16>
    %cst_71 = arith.constant dense<0.000000e+00> : vector<4x64xf32>
    %76 = tpu.matmul %75, %58, %cst_71 {dimension_numbers = #tpu.dot_dimension_numbers<[1], [0], [0], [1], [0, 0, 1, 1], [], []>} : vector<4x8xbf16>, vector<8x64xbf16>, vector<4x64xf32> -> vector<4x64xf32>
    %77 = arith.truncf %76 : vector<4x64xf32> to vector<4x64xbf16>
    %c2_72 = arith.constant 2 : index
    %c0_73 = arith.constant 0 : index
    %c0_74 = arith.constant 0 : index
    %78 = vector.load %arg8[%c2_72, %c0_73, %c0_74] : memref<3x64x64xbf16, #tpu.memory_space<vmem>>, vector<1x64x64xbf16>
    %79 = vector.shape_cast %78 : vector<1x64x64xbf16> to vector<64x64xbf16>
    %cst_75 = arith.constant dense<0.000000e+00> : vector<4x64xf32>
    %80 = tpu.matmul %77, %79, %cst_75 {dimension_numbers = #tpu.dot_dimension_numbers<[1], [0], [0], [1], [0, 0, 1, 1], [], []>} : vector<4x64xbf16>, vector<64x64xbf16>, vector<4x64xf32> -> vector<4x64xf32>
    %81 = arith.addf %73, %80 : vector<4x64xf32>
    %c0_76 = arith.constant 0 : index
    %c0_77 = arith.constant 0 : index
    %82 = vector.load %arg9[%c0_76, %c0_77] : memref<1x64xf32, #tpu.memory_space<vmem>>, vector<1x64xf32>
    %83 = vector.broadcast %82 : vector<1x64xf32> to vector<4x64xf32>
    %84 = arith.addf %81, %83 : vector<4x64xf32>
    %cst_78 = arith.constant 0.000000e+00 : f32
    %85 = vector.broadcast %cst_78 : f32 to vector<4x64xf32>
    %86 = arith.maximumf %84, %85 : vector<4x64xf32>
    %c0_79 = arith.constant 0 : index
    %c0_80 = arith.constant 0 : index
    %87 = vector.load %arg10[%c0_79, %c0_80] : memref<4x64xf32, #tpu.memory_space<vmem>>, vector<4x64xf32>
    tpu.vector_store %arg10[%c0_79, %c0_80], %86 {strides = array<i32>} : memref<4x64xf32, #tpu.memory_space<vmem>>, vector<4x64xf32>,
    return
  }
}

</mosaic_0001>

<bundles_post_ra>
// kernel: encoder_forward.1
= control target key start
LH: loop header
LB: loop body
LE: loop exit
PB: predicated region body
PF: predicated region fallthrough
CT: control target
= control target key end

     0   :  { %vm59_vm0 = vcmask 261120   ;;  %vm145_vm1 = vcmask 523264   ;;  %vm292_vm2 = vcmask 130048   ;;  %vm507_vm3 = vcmask 1043456   ;;  %s1221_s0 = inlined_call_operand.vmem [shape: bf16[32,64], index: 0, kind: input, shape index: {}]   ;;  %s1222_s2 = inlined_call_operand.vmem [shape: bf16[3,64,64], index: 2, kind: input, shape index: {}]   ;;  %s1223_s1 = inlined_call_operand.vmem [shape: bf16[3,16,32], index: 1, kind: input, shape index: {}]   ;;  %s1224_s3 = inlined_call_operand.vmem [shape: f32[1,64], index: 3, kind: input, shape index: {}]   ;;  %s1225_s5 = inlined_call_operand.vmem [shape: bf16[3,64,64], index: 5, kind: input, shape index: {}]   ;;  %s1226_s4 = inlined_call_operand.vmem [shape: bf16[3,8,16], index: 4, kind: input, shape index: {}]   ;;  %s1227_s6 = inlined_call_operand.vmem [shape: f32[1,64], index: 6, kind: input, shape index: {}]   ;;  %s1228_s8 = inlined_call_operand.vmem [shape: bf16[3,64,64], index: 8, kind: input, shape index: {}]   ;;  %s1229_s7 = inlined_call_operand.vmem [shape: bf16[3,4,8], index: 7, kind: input, shape index: {}]   ;;  %s1230_s9 = inlined_call_operand.vmem [shape: f32[1,64], index: 9, kind: input, shape index: {}]   ;;  %s1231_s10 = inlined_call_operand.vmem [shape: f32[4,64], index: 10, kind: output, shape index: {}]  }
   0x1   :  { %v961_v0 = vld [vmem:[%s1221_s0 + $0x8] sm:$0xff]  ;;  %v971_v1 = vld [vmem:[%s1222_s2 + $0x38] sm:$0xff]  ;;  %v960_v2 = vld [vmem:[%s1221_s0] sm:$0xff]  ;;  %vm503_vm4 = vcmask 64512   ;;  %vm716_vm5 = vcmask 519168  }
   0x2   :  { %69 = vmatpush.bf16.msra.mxu0 %v961_v0  ;;  %103 = vmatpush.bf16.msra.mxu1 %v961_v0  ;;  %v966_v3 = vld [vmem:[%s1222_s2 + $0x18] sm:$0xff]  ;;  %v962_v4 = vld [vmem:[%s1223_s1] sm:$0xff]  ;;  %v967_v5 = vld [vmem:[%s1223_s1 + $0x8] sm:$0xff] }
   0x3   :  { %153 = vmatpush.bf16.msra.mxu2 %v971_v1  ;;  %194 = vmatpush.bf16.msra.mxu3 %v966_v3  ;;  %v972_v6 = vld [vmem:[%s1223_s1 + $0x10] sm:$0xff]  ;;  %v969_v9 = vld [vmem:[%s1222_s2 + $0x28] sm:$0xff]  ;;  %v968_v11 = vld [vmem:[%s1222_s2 + $0x20] sm:$0xff] }
   0x4   :  { %v970_v7 = vld [vmem:[%s1222_s2 + $0x30] sm:$0xff]  ;;  %v964_v10 = vld [vmem:[%s1222_s2 + $0x8] sm:$0xff]  ;;  %v963_v12 = vld [vmem:[%s1222_s2] sm:$0xff] }
   0x5   :  { %v965_v8 = vld [vmem:[%s1222_s2 + $0x10] sm:$0xff]  ;;  %v976_v13 = vld [vmem:[%s1222_s2 + $0x58] sm:$0xff]  ;;  %v974_v15 = vld [vmem:[%s1222_s2 + $0x48] sm:$0xff] }
   0x6   :  { %70 = vmatpush.bf16.msra.mxu0 %v960_v2  ;;  %104 = vmatpush.bf16.msra.mxu1 %v960_v2  ;;  %v975_v14 = vld [vmem:[%s1222_s2 + $0x50] sm:$0xff]  ;;  %v973_v16 = vld [vmem:[%s1222_s2 + $0x40] sm:$0xff]  ;;  %v984_v32 = vld [vmem:[%s1225_s5 + $0x38] sm:$0xff] }
   0x7   :  { %154 = vmatpush.bf16.msra.mxu2 %v970_v7  ;;  %195 = vmatpush.bf16.msra.mxu3 %v965_v8  ;;  %v980_v33 = vld [vmem:[%s1225_s5 + $0x18] sm:$0xff]  ;;  %v1001_v35 = vld [vmem:[%s1224_s3] ss:$0 sm:$0xff]  ;;  %v983_v36 = vld [vmem:[%s1225_s5 + $0x30] sm:$0xff] }
   0x8   :  { %v979_v37 = vld [vmem:[%s1225_s5 + $0x10] sm:$0xff]  ;;  %v982_v42 = vld [vmem:[%s1225_s5 + $0x28] sm:$0xff]  ;;  %v291_v48 = vld [vmem:[%s1226_s4] sm:$0xf] }
   0x9   :  { %734 = vmatmul.msk.bf16.vlgmr.msra.gmra.mxu0 %vm59_vm0, %v962_v4  ;;  %741 = vmatmul.msk.bf16.vlgmr.msra.gmra.mxu1 %vm59_vm0, %v967_v5  ;;  %v978_v43 = vld [vmem:[%s1225_s5 + $0x8] sm:$0xff]  ;;  %v817_v49 = vld [vmem:[%s1226_s4 + $0x4] sm:$0xf]  ;;  %v988_v53 = vld [vmem:[%s1225_s5 + $0x58] sm:$0xff] }
   0xa   :  { %221 = vmatpush.bf16.msrb.mxu0 %v961_v0  ;;  %270 = vmatpush.bf16.msrb.mxu1 %v976_v13  ;;  %v861_v50 = vld [vmem:[%s1226_s4 + $0x8] sm:$0xf]  ;;  %v981_v51 = vld [vmem:[%s1225_s5 + $0x20] sm:$0xff]  ;;  %v987_v54 = vld [vmem:[%s1225_s5 + $0x50] sm:$0xff] }
   0xb   :  { %155 = vmatpush.bf16.msra.mxu2 %v969_v9  ;;  %196 = vmatpush.bf16.msra.mxu3 %v964_v10  ;;  %v977_v52 = vld [vmem:[%s1225_s5] sm:$0xff]  ;;  %v986_v55 = vld [vmem:[%s1225_s5 + $0x48] sm:$0xff]  ;;  %v996_v7 = vld [vmem:[%s1228_s8 + $0x38] sm:$0xff] }
   0xc   :  { %v985_v56 = vld [vmem:[%s1225_s5 + $0x40] sm:$0xff]  ;;  %v991_v10 = vld [vmem:[%s1228_s8 + $0x10] sm:$0xff] }
   0xd   :  { %v1002_v9 = vld [vmem:[%s1227_s6] ss:$0 sm:$0xff] }
   0xe   :  { %222 = vmatpush.bf16.msrb.mxu0 %v960_v2  ;;  %271 = vmatpush.bf16.msrb.mxu1 %v975_v14  ;;  %v990_v14 = vld [vmem:[%s1228_s8 + $0x8] sm:$0xff] }
   0xf   :  { %156 = vmatpush.bf16.msra.mxu2 %v968_v11  ;;  %197 = vmatpush.bf16.msra.mxu3 %v963_v12 }
  0x12   :  { %272 = vmatpush.bf16.msrb.mxu1 %v974_v15  ;;  %377 = vmatpush.bf16.msra.mxu0 %v984_v32 }
  0x16   :  { %273 = vmatpush.bf16.msrb.mxu1 %v973_v16  ;;  %378 = vmatpush.bf16.msra.mxu0 %v983_v36 }
  0x19   :  { %790 = vmatmul.msk.bf16.vlgmr.msrb.gmra.mxu0 %vm59_vm0, %v972_v6  ;;  %v992_v6 = vld [vmem:[%s1228_s8 + $0x18] sm:$0xff] }
  0x1a   :  { %417 = vmatpush.bf16.msra.mxu1 %v980_v33  ;;  %379 = vmatpush.bf16.msra.mxu0 %v982_v42 }
  0x1e   :  { %418 = vmatpush.bf16.msra.mxu1 %v979_v37  ;;  %380 = vmatpush.bf16.msra.mxu0 %v981_v51 }
  0x22   :  { %419 = vmatpush.bf16.msra.mxu1 %v978_v43 }
  0x26   :  { %420 = vmatpush.bf16.msra.mxu1 %v977_v52 }
  0x86   :  { %v72_v17 = vpop.f32.mrf.mxu0  ;;  %v106_v18 = vpop.f32.mrf.mxu1 }
  0x8e   :  { %v74_v19 = vpop.f32.mrf.mxu0  ;;  %v108_v20 = vpop.f32.mrf.mxu1 }
  0x8f   :  { %v77_v21 = vpack.c.bf16 %v74_v19, %v72_v17  ;;  %v111_v22 = vpack.c.bf16 %v108_v20, %v106_v18  ;;  %v502_v19 = vld [vmem:[%s1229_s7] sm:$0x3]  ;;  %v889_v20 = vld [vmem:[%s1229_s7 + $0x2] sm:$0x3] }
  0x91   :  { %766 = vmatmul.msk.bf16.vlgmr.msra.gmra.mxu2 %vm145_vm1, %v111_v22  ;;  %783 = vmatmul.msk.bf16.vlgmr.msra.gmra.mxu3 %vm145_vm1, %v77_v21  ;;  %v933_v21 = vld [vmem:[%s1229_s7 + $0x4] sm:$0x3]  ;;  %v995_v22 = vld [vmem:[%s1228_s8 + $0x30] sm:$0xff] }
  0x96   :  { %v224_v23 = vpop.f32.mrf.mxu0 }
  0x9e   :  { %v226_v24 = vpop.f32.mrf.mxu0 }
  0x9f   :  { %v229_v25 = vpack.c.bf16 %v226_v24, %v224_v23  ;;  %v994_v23 = vld [vmem:[%s1228_s8 + $0x28] sm:$0xff]  ;;  %v989_v24 = vld [vmem:[%s1228_s8] sm:$0xff] }
  0xa1   :  { %815 = vmatmul.msk.bf16.vlgmr.msrb.gmra.mxu1 %vm145_vm1, %v229_v25  ;;  %v993_v25 = vld [vmem:[%s1228_s8 + $0x20] sm:$0xff] }
 0x114   :  { %v158_v26 = vpop.f32.mrf.mxu2  ;;  %v199_v27 = vpop.f32.mrf.mxu3 }
 0x115   :  { %v200_v29 = vadd.f32 %v199_v27, %v158_v26  ;;  %v1000_v26 = vld [vmem:[%s1228_s8 + $0x58] sm:$0xff]  ;;  %v999_v27 = vld [vmem:[%s1228_s8 + $0x50] sm:$0xff] }
 0x11c   :  { %v160_v30 = vpop.f32.mrf.mxu2  ;;  %v201_v31 = vpop.f32.mrf.mxu3 }
 0x11d   :  { %v202_v38 = vadd.f32 %v201_v31, %v160_v30 }
 0x11e   :  { %v275_v28 = vpop.f32.mrf.mxu1 }
 0x11f   :  { %v280_v34 = vadd.f32 %v275_v28, %v200_v29  ;;  %v998_v28 = vld [vmem:[%s1228_s8 + $0x48] sm:$0xff]  ;;  %v997_v29 = vld [vmem:[%s1228_s8 + $0x40] sm:$0xff] }
 0x121   :  { %v286_v40 = vadd.f32 %v1001_v35, %v280_v34 }
 0x123   :  { %v288_v45 = vmax.f32 %v286_v40, 0.0 }
 0x126   :  { %v277_v39 = vpop.f32.mrf.mxu1 }
 0x127   :  { %v281_v41 = vadd.f32 %v277_v39, %v202_v38 }
 0x129   :  { %v287_v44 = vadd.f32 %v1001_v35, %v281_v41 }
 0x12b   :  { %v289_v46 = vmax.f32 %v287_v44, 0.0  ;;  %v1003_v44 = vld [vmem:[%s1230_s9] ss:$0 sm:$0xff] }
 0x12d   :  { %v290_v47 = vpack.c.bf16 %v289_v46, %v288_v45 }
 0x12f   :  { %303 = vmatpush.bf16.msrb.mxu2 %v290_v47  ;;  %330 = vmatpush.bf16.msrb.mxu3 %v290_v47 }
 0x132   :  { %816 = vmatmul.msk.bf16.vlgmr.msrb.gmra.mxu2 %vm292_vm2, %v291_v48  ;;  %818 = vmatmul.msk.bf16.vlgmr.msrb.gmra.mxu3 %vm292_vm2, %v817_v49 }
 0x133   :  { %438 = vmatpush.bf16.msra.mxu2 %v290_v47  ;;  %485 = vmatpush.bf16.msra.mxu3 %v988_v53 }
 0x137   :  { %486 = vmatpush.bf16.msra.mxu3 %v987_v54  ;;  %592 = vmatpush.bf16.msrb.mxu2 %v996_v7 }
 0x13b   :  { %487 = vmatpush.bf16.msra.mxu3 %v986_v55  ;;  %593 = vmatpush.bf16.msrb.mxu2 %v995_v22 }
 0x13f   :  { %488 = vmatpush.bf16.msra.mxu3 %v985_v56  ;;  %594 = vmatpush.bf16.msrb.mxu2 %v994_v23 }
 0x142   :  { %862 = vmatmul.msk.bf16.vlgmr.msra.gmra.mxu2 %vm292_vm2, %v861_v50 }
 0x143   :  { %632 = vmatpush.bf16.msrb.mxu3 %v992_v6  ;;  %595 = vmatpush.bf16.msrb.mxu2 %v993_v25 }
 0x147   :  { %633 = vmatpush.bf16.msrb.mxu3 %v991_v10 }
 0x14b   :  { %634 = vmatpush.bf16.msrb.mxu3 %v990_v14 }
 0x14f   :  { %635 = vmatpush.bf16.msrb.mxu3 %v989_v24 }
 0x1b5   :  { %v305_v57 = vpop.f32.mrf.mxu2  ;;  %v332_v58 = vpop.f32.mrf.mxu3 }
 0x1b6   :  { %v309_v59 = vpack.c.bf16 %v305_v57, %v305_v57  ;;  %v336_v60 = vpack.c.bf16 %v332_v58, %v332_v58 }
 0x1b8   :  { %843 = vmatmul.msk.bf16.vlgmr.msra.gmra.mxu0 %vm145_vm1, %v336_v60  ;;  %860 = vmatmul.msk.bf16.vlgmr.msra.gmra.mxu1 %vm145_vm1, %v309_v59 }
 0x1bd   :  { %v307_v61 = vpop.f32.mrf.mxu2  ;;  %v334_v62 = vpop.f32.mrf.mxu3 }
 0x1c5   :  { %v440_v63 = vpop.f32.mrf.mxu2 }
 0x1c6   :  { %v444_v0 = vpack.c.bf16 %v440_v63, %v440_v63 }
 0x1c8   :  { %887 = vmatmul.msk.bf16.vlgmr.msra.gmra.mxu3 %vm145_vm1, %v444_v0 }
 0x1cd   :  { %v442_v1 = vpop.f32.mrf.mxu2 }
 0x235   :  { %v382_v2 = vpop.f32.mrf.mxu0  ;;  %v422_v3 = vpop.f32.mrf.mxu1 }
 0x236   :  { %v423_v8 = vadd.f32 %v422_v3, %v382_v2 }
 0x23d   :  { %v424_v4 = vpop.f32.mrf.mxu1  ;;  %v384_v5 = vpop.f32.mrf.mxu0 }
 0x24b   :  { %v490_v11 = vpop.f32.mrf.mxu3 }
 0x24c   :  { %v494_v12 = vadd.f32 %v490_v11, %v423_v8 }
 0x24e   :  { %v499_v13 = vadd.f32 %v1002_v9, %v494_v12 }
 0x250   :  { %v500_v15 = vmax.f32 %v499_v13, 0.0 }
 0x252   :  { %v501_v16 = vpack.c.bf16 %v500_v15, %v500_v15 }
 0x253   :  { %v492_v17 = vpop.f32.mrf.mxu3 }
 0x254   :  { %v509_v18 = vsel %vm507_vm3, %v501_v16, 0 }
 0x255   :  { %518 = vmatpush.bf16.msrb.mxu0 %v509_v18  ;;  %545 = vmatpush.bf16.msrb.mxu1 %v509_v18 }
 0x258   :  { %888 = vmatmul.msk.bf16.vlgmr.msrb.gmra.mxu0 %vm503_vm4, %v502_v19  ;;  %890 = vmatmul.msk.bf16.vlgmr.msrb.gmra.mxu1 %vm503_vm4, %v889_v20 }
 0x259   :  { %653 = vmatpush.bf16.msra.mxu0 %v509_v18  ;;  %700 = vmatpush.bf16.msra.mxu1 %v1000_v26 }
 0x25d   :  { %701 = vmatpush.bf16.msra.mxu1 %v999_v27 }
 0x261   :  { %702 = vmatpush.bf16.msra.mxu1 %v998_v28 }
 0x265   :  { %703 = vmatpush.bf16.msra.mxu1 %v997_v29 }
 0x268   :  { %934 = vmatmul.msk.bf16.vlgmr.msra.gmra.mxu0 %vm503_vm4, %v933_v21 }
 0x2d5   :  { %v520_v30 = vpop.f32.mrf.mxu0  ;;  %v547_v31 = vpop.f32.mrf.mxu1 }
 0x2d6   :  { %v524_v32 = vpack.c.bf16 %v520_v30, %v520_v30  ;;  %v551_v33 = vpack.c.bf16 %v547_v31, %v547_v31 }
 0x2d8   :  { %932 = vmatmul.msk.bf16.vlgmr.msrb.gmra.mxu3 %vm145_vm1, %v524_v32  ;;  %915 = vmatmul.msk.bf16.vlgmr.msrb.gmra.mxu2 %vm145_vm1, %v551_v33 }
 0x2dd   :  { %v522_v34 = vpop.f32.mrf.mxu0  ;;  %v549_v35 = vpop.f32.mrf.mxu1 }
 0x2e5   :  { %v655_v36 = vpop.f32.mrf.mxu0 }
 0x2e6   :  { %v659_v37 = vpack.c.bf16 %v655_v36, %v655_v36 }
 0x2e8   :  { %959 = vmatmul.msk.bf16.vlgmr.msra.gmra.mxu1 %vm145_vm1, %v659_v37 }
 0x2ed   :  { %v657_v38 = vpop.f32.mrf.mxu0 }
 0x35b   :  { %v637_v39 = vpop.f32.mrf.mxu3  ;;  %v597_v40 = vpop.f32.mrf.mxu2 }
 0x35c   :  { %v638_v43 = vadd.f32 %v637_v39, %v597_v40 }
 0x363   :  { %v639_v41 = vpop.f32.mrf.mxu3  ;;  %v599_v42 = vpop.f32.mrf.mxu2 }
 0x365   :  { %v705_v45 = vpop.f32.mrf.mxu1 }
 0x366   :  { %v709_v46 = vadd.f32 %v705_v45, %v638_v43 }
 0x368   :  { %v714_v47 = vadd.f32 %v1003_v44, %v709_v46 }
 0x36a   :  { %v715_v48 = vmax.f32 %v714_v47, 0.0 }
 0x36c   :  { %717 = vst.msk [vmem:[%s1231_s10] sm:$0xf] %vm716_vm5, %v715_v48 }
 0x36d   :  { %v707_v49 = vpop.f32.mrf.mxu1 }

</bundles_post_ra>
